<compile_context>
chip_gen: v7x
topology: tpu7x:2x2x1
jax: 0.10.0
libtpu: 0.0.40
codegen_flags: <defaults>
</compile_context>

<pallas_src>
import functools

import jax
import jax.numpy as jnp
from jax.experimental import pallas as pl
from jax.experimental.pallas import tpu as pltpu

_EPS = 1e-8
_MAX_TB = 4096          # sanity cap on rows per grid step
_MIN_TB = 256           # don't shred tiles below this (per-step overhead ~0.35us)
_TARGET_STEPS = 4       # aim for >= this many balanced grid steps (v7x megacore)


def _cdiv(a, b):
    return -(-a // b)


def _round_up(x, m):
    return ((x + m - 1) // m) * m


def _vmem_capacity_bytes():
    """Physical VMEM of the local TensorCore; conservative fallback (v7x = 64 MiB)."""
    try:
        cap = getattr(pltpu.get_tpu_info(), "vmem_capacity_bytes", None)
        if cap:
            return int(cap)
    except Exception:
        pass
    return 64 * 1024 * 1024


def _vmem_limit_bytes():
    return max(32 * 1024 * 1024, (_vmem_capacity_bytes() * 3) // 4)


def _choose_tb(batch, feat, itemsize):
    """Rows per grid step.

    The VMEM budget covers the 3 double-buffered input DMA tiles *and* ~5 full-tile
    f32 intermediates (q/p/n upcasts plus product temporaries).  Per-generation via
    get_tpu_info(): larger tiles on v5e/v6e (128 MiB VMEM), smaller on v7x (64 MiB).
    Then cap so the 'parallel' grid axis has >= _TARGET_STEPS balanced steps (both
    v7x TensorCores fed) without shrinking below _MIN_TB rows.
    """
    budget = int(_vmem_capacity_bytes() * 0.45)
    per_row = 3 * 2 * feat * itemsize + 5 * feat * 4
    tb = budget // max(per_row, 1)
    tb = max(8, min(_MAX_TB, (tb // 8) * 8))
    balanced = _round_up(_cdiv(batch, _TARGET_STEPS), 8)
    tb = min(tb, max(balanced, _MIN_TB))
    if tb >= batch:
        return batch          # single full-batch block: block dims == array dims
    return max(8, (tb // 8) * 8)


def _cos_pair(q, p, n):
    """cos(q,p) and cos(q,n) along the last axis, keepdims; query norm hoisted."""
    q2 = jnp.sum(q * q, axis=-1, keepdims=True)   # hoisted once, reused for both terms
    p2 = jnp.sum(p * p, axis=-1, keepdims=True)
    n2 = jnp.sum(n * n, axis=-1, keepdims=True)
    dot_qp = jnp.sum(q * p, axis=-1, keepdims=True)
    dot_qn = jnp.sum(q * n, axis=-1, keepdims=True)
    # 1/max(||q||*||x||, eps) == rsqrt(max(||q||^2*||x||^2, eps^2)); rsqrt goes to the
    # EUP slot (separate VLIW slot from the VPU), so it co-issues essentially for free.
    cos_qp = dot_qp * jax.lax.rsqrt(jnp.maximum(q2 * p2, _EPS * _EPS))
    cos_qn = dot_qn * jax.lax.rsqrt(jnp.maximum(q2 * n2, _EPS * _EPS))
    return cos_qp, cos_qn


def _valid_mask(tb, batch):
    rows = pl.program_id(0) * tb + jax.lax.broadcasted_iota(jnp.int32, (tb, 1), 0)
    return rows < batch


def _emit_partial(out_ref, masked_vals):
    """Reduce the masked per-sample column to a scalar and write it lane-dense as a
    broadcast (1, 8, 128) block (one unmasked vector store per grid step)."""
    partial = jnp.sum(masked_vals, axis=0, keepdims=True)          # (1, 1)
    out_ref[...] = jnp.broadcast_to(partial.reshape(1, 1, 1), out_ref.shape)


def _triplet_kernel(tb, batch, margin, q_ref, p_ref, n_ref, out_ref):
    q = q_ref[...].astype(jnp.float32)
    p = p_ref[...].astype(jnp.float32)
    n = n_ref[...].astype(jnp.float32)
    cos_qp, cos_qn = _cos_pair(q, p, n)
    per = jnp.maximum((1.0 - cos_qp) - (1.0 - cos_qn) + margin, 0.0)   # (TB, 1)
    # jnp.where (a select), NOT a multiply: NaN/Inf in out-of-bounds rows must not leak.
    _emit_partial(out_ref, jnp.where(_valid_mask(tb, batch), per, 0.0))


def _dpr_kernel(tb, batch, q_ref, p_ref, n_ref, pos_ref, neg_ref):
    q = q_ref[...].astype(jnp.float32)
    p = p_ref[...].astype(jnp.float32)
    n = n_ref[...].astype(jnp.float32)
    cos_qp, cos_qn = _cos_pair(q, p, n)
    valid = _valid_mask(tb, batch)
    _emit_partial(pos_ref, jnp.where(valid, jnp.exp(cos_qp), 0.0))
    _emit_partial(neg_ref, jnp.where(valid, jnp.exp(cos_qn), 0.0))


def _partial_sums_call(make_kernel, num_outputs, query, positive_key, negative_keys):
    """Tile the batch axis (no padding); each grid step emits per-step scalar partials
    packed into a lane-dense (1, 8, 128) block.  Returns `grid`-length partial vectors."""
    B, D = query.shape
    tb = _choose_tb(B, D, jnp.dtype(query.dtype).itemsize)
    grid = _cdiv(B, tb)

    in_spec = pl.BlockSpec((tb, D), lambda i: (i, 0))
    out_spec = pl.BlockSpec((1, 8, 128), lambda i: (i, 0, 0))

    outs = pl.pallas_call(
        make_kernel(tb),
        out_shape=[jax.ShapeDtypeStruct((grid, 8, 128), jnp.float32)] * num_outputs,
        grid=(grid,),
        in_specs=[in_spec, in_spec, in_spec],
        out_specs=[out_spec] * num_outputs,
        compiler_params=pltpu.CompilerParams(
            dimension_semantics=("parallel",),      # independent tiles -> both v7x TCs
            vmem_limit_bytes=_vmem_limit_bytes(),
        ),
    )(query, positive_key, negative_keys)
    # Each (1, 8, 128) block holds that step's scalar partial broadcast; read one lane.
    return [o[:, 0, 0] for o in outs]


def triplet_loss(query, positive_key, negative_keys, margin=0.5):
    B = query.shape[0]
    (partials,) = _partial_sums_call(
        lambda tb: functools.partial(_triplet_kernel, tb, B, float(margin)),
        1, query, positive_key, negative_keys)
    # reduction='mean' (torch default for triplet_margin_with_distance_loss)
    return jnp.sum(partials) / B


def dpr_loss(query, positive_key, negative_keys, **kwargs):
    B = query.shape[0]
    pos, neg = _partial_sums_call(
        lambda tb: functools.partial(_dpr_kernel, tb, B),
        2, query, positive_key, negative_keys)
    sum_pos = jnp.sum(pos)
    sum_neg = jnp.sum(neg)
    return -jnp.log(sum_pos / (sum_pos + sum_neg))


class ContrastiveLoss:
    """JAX/Pallas port of the PyTorch ContrastiveLoss module."""

    def __init__(self, loss_fn="triplet_loss", **kwargs):
        self.kwargs = kwargs
        if loss_fn == "triplet_loss":
            loss = triplet_loss
        elif loss_fn == "dpr_loss":
            loss = dpr_loss
        else:
            raise ValueError(f"Unknown loss function {loss_fn}")
        self._fn = jax.jit(lambda q, p, n: loss(q, p, n, **self.kwargs))

    def __call__(self, query, positive_key, negative_keys):
        return self._fn(query, positive_key, negative_keys)


# ------------------------- pure-JAX references (for checking) -------------------------
def _ref_cos(a, b):
    dot = jnp.sum(a * b, axis=-1)
    na = jnp.linalg.norm(a, axis=-1)
    nb = jnp.linalg.norm(b, axis=-1)
    return dot / jnp.maximum(na * nb, _EPS)


def _ref_triplet(q, p, n, margin=0.5):
    d_pos = 1.0 - _ref_cos(q, p)
    d_neg = 1.0 - _ref_cos(q, n)
    return jnp.mean(jnp.maximum(d_pos - d_neg + margin, 0.0))


def _ref_dpr(q, p, n):
    sp = jnp.sum(jnp.exp(_ref_cos(q, p)))
    sn = jnp.sum(jnp.exp(_ref_cos(q, n)))
    return -jnp.log(sp / (sp + sn))


def _check(B, D, key):
    kq, kp, kn = jax.random.split(key, 3)
    query = jax.random.normal(kq, (B, D), dtype=jnp.float32)
    positive_key = jax.random.normal(kp, (B, D), dtype=jnp.float32)
    negative_keys = jax.random.normal(kn, (B, D), dtype=jnp.float32)

    triplet_mod = ContrastiveLoss(loss_fn="triplet_loss", margin=0.5)
    triplet_out = jax.block_until_ready(triplet_mod(query, positive_key, negative_keys))
    dpr_mod = ContrastiveLoss(loss_fn="dpr_loss")
    dpr_out = jax.block_until_ready(dpr_mod(query, positive_key, negative_keys))

    ref_t = _ref_triplet(query, positive_key, negative_keys, margin=0.5)
    ref_d = _ref_dpr(query, positive_key, negative_keys)
    assert jnp.allclose(triplet_out, ref_t, atol=1e-5, rtol=1e-5), (B, D, triplet_out, ref_t)
    assert jnp.allclose(dpr_out, ref_d, atol=1e-5, rtol=1e-5), (B, D, dpr_out, ref_d)


if __name__ == "__main__":
    key = jax.random.PRNGKey(0)
    k1, k2 = jax.random.split(key)
    # small embedding batch consistent with the module's forward (default module path)
    _check(8, 32, k1)
    # ragged batch (not a multiple of the tile) to exercise the masked partial block
    _check(300, 64, k2)
    print("KERNEL_OK")
</pallas_src>

<mosaic_0001>
module attributes {stable_mosaic.version = 11 : i64} {
  func.func @_triplet_kernel(%arg0: i32, %arg1: memref<8x32xf32, #tpu.memory_space<vmem>>, %arg2: memref<8x32xf32, #tpu.memory_space<vmem>>, %arg3: memref<8x32xf32, #tpu.memory_space<vmem>>, %arg4: memref<1x8x128xf32, #tpu.memory_space<vmem>>) attributes {dimension_semantics = [#tpu.dimension_semantics<parallel>], iteration_bounds = array<i64: 1>, scalar_prefetch = 0 : i64, scratch_operands = 0 : i64, tpu.core_type = #tpu.core_type<tc>, window_params = [{transform_indices = @transform_0, window_bounds = array<i64: 8, 32>}, {transform_indices = @transform_1, window_bounds = array<i64: 8, 32>}, {transform_indices = @transform_2, window_bounds = array<i64: 8, 32>}, {transform_indices = @transform_3, window_bounds = array<i64: 1, 8, 128>}]} {
    %c0 = arith.constant 0 : index
    %c0_0 = arith.constant 0 : index
    %0 = vector.load %arg1[%c0, %c0_0] : memref<8x32xf32, #tpu.memory_space<vmem>>, vector<8x32xf32>
    %c0_1 = arith.constant 0 : index
    %c0_2 = arith.constant 0 : index
    %1 = vector.load %arg2[%c0_1, %c0_2] : memref<8x32xf32, #tpu.memory_space<vmem>>, vector<8x32xf32>
    %c0_3 = arith.constant 0 : index
    %c0_4 = arith.constant 0 : index
    %2 = vector.load %arg3[%c0_3, %c0_4] : memref<8x32xf32, #tpu.memory_space<vmem>>, vector<8x32xf32>
    %3 = arith.mulf %0, %0 : vector<8x32xf32>
    %cst = arith.constant dense<0.000000e+00> : vector<8xf32>
    %4 = vector.multi_reduction <add>, %3, %cst [1] : vector<8x32xf32> to vector<8xf32>
    %5 = vector.shape_cast %4 : vector<8xf32> to vector<8x1xf32>
    %6 = arith.mulf %1, %1 : vector<8x32xf32>
    %cst_5 = arith.constant dense<0.000000e+00> : vector<8xf32>
    %7 = vector.multi_reduction <add>, %6, %cst_5 [1] : vector<8x32xf32> to vector<8xf32>
    %8 = vector.shape_cast %7 : vector<8xf32> to vector<8x1xf32>
    %9 = arith.mulf %2, %2 : vector<8x32xf32>
    %cst_6 = arith.constant dense<0.000000e+00> : vector<8xf32>
    %10 = vector.multi_reduction <add>, %9, %cst_6 [1] : vector<8x32xf32> to vector<8xf32>
    %11 = vector.shape_cast %10 : vector<8xf32> to vector<8x1xf32>
    %12 = arith.mulf %0, %1 : vector<8x32xf32>
    %cst_7 = arith.constant dense<0.000000e+00> : vector<8xf32>
    %13 = vector.multi_reduction <add>, %12, %cst_7 [1] : vector<8x32xf32> to vector<8xf32>
    %14 = vector.shape_cast %13 : vector<8xf32> to vector<8x1xf32>
    %15 = arith.mulf %0, %2 : vector<8x32xf32>
    %cst_8 = arith.constant dense<0.000000e+00> : vector<8xf32>
    %16 = vector.multi_reduction <add>, %15, %cst_8 [1] : vector<8x32xf32> to vector<8xf32>
    %17 = vector.shape_cast %16 : vector<8xf32> to vector<8x1xf32>
    %18 = arith.mulf %5, %8 : vector<8x1xf32>
    %cst_9 = arith.constant 1.000000e-16 : f32
    %19 = vector.broadcast %cst_9 : f32 to vector<8x1xf32>
    %20 = arith.maximumf %18, %19 : vector<8x1xf32>
    %21 = math.rsqrt %20 : vector<8x1xf32>
    %22 = arith.mulf %14, %21 : vector<8x1xf32>
    %23 = arith.mulf %5, %11 : vector<8x1xf32>
    %cst_10 = arith.constant 1.000000e-16 : f32
    %24 = vector.broadcast %cst_10 : f32 to vector<8x1xf32>
    %25 = arith.maximumf %23, %24 : vector<8x1xf32>
    %26 = math.rsqrt %25 : vector<8x1xf32>
    %27 = arith.mulf %17, %26 : vector<8x1xf32>
    %cst_11 = arith.constant 1.000000e+00 : f32
    %28 = vector.broadcast %cst_11 : f32 to vector<8x1xf32>
    %29 = arith.subf %28, %22 : vector<8x1xf32>
    %cst_12 = arith.constant 1.000000e+00 : f32
    %30 = vector.broadcast %cst_12 : f32 to vector<8x1xf32>
    %31 = arith.subf %30, %27 : vector<8x1xf32>
    %32 = arith.subf %29, %31 : vector<8x1xf32>
    %cst_13 = arith.constant 5.000000e-01 : f32
    %33 = vector.broadcast %cst_13 : f32 to vector<8x1xf32>
    %34 = arith.addf %32, %33 : vector<8x1xf32>
    %cst_14 = arith.constant 0.000000e+00 : f32
    %35 = vector.broadcast %cst_14 : f32 to vector<8x1xf32>
    %36 = arith.maximumf %34, %35 : vector<8x1xf32>
    %c8_i32 = arith.constant 8 : i32
    %37 = arith.muli %arg0, %c8_i32 : i32
    %38 = tpu.iota {dimensions = array<i32: 0>} : vector<8x1xi32>
    %39 = vector.broadcast %37 : i32 to vector<8x1xi32>
    %40 = arith.addi %39, %38 : vector<8x1xi32>
    %c8_i32_15 = arith.constant 8 : i32
    %41 = vector.broadcast %c8_i32_15 : i32 to vector<8x1xi32>
    %42 = arith.cmpi slt, %40, %41 : vector<8x1xi32>
    %cst_16 = arith.constant 0.000000e+00 : f32
    %43 = vector.broadcast %cst_16 : f32 to vector<8x1xf32>
    %44 = arith.select %42, %36, %43 : vector<8x1xi1>, vector<8x1xf32>
    %cst_17 = arith.constant dense<0.000000e+00> : vector<1xf32>
    %45 = vector.multi_reduction <add>, %44, %cst_17 [0] : vector<8x1xf32> to vector<1xf32>
    %46 = vector.shape_cast %45 : vector<1xf32> to vector<1x1xf32>
    %47 = vector.shape_cast %46 : vector<1x1xf32> to vector<1x1x1xf32>
    %48 = vector.shape_cast %47 : vector<1x1x1xf32> to vector<1x1x1xf32>
    %49 = vector.broadcast %48 : vector<1x1x1xf32> to vector<1x8x128xf32>
    %c0_18 = arith.constant 0 : index
    %c0_19 = arith.constant 0 : index
    %c0_20 = arith.constant 0 : index
    %50 = vector.load %arg4[%c0_18, %c0_19, %c0_20] : memref<1x8x128xf32, #tpu.memory_space<vmem>>, vector<1x8x128xf32>
    tpu.vector_store %arg4[%c0_18, %c0_19, %c0_20], %49 {strides = array<i32>} : memref<1x8x128xf32, #tpu.memory_space<vmem>>, vector<1x8x128xf32>,
    return
  }
  func.func @transform_0(%arg0: i32) -> (i32, i32) {
    %c0_i32 = arith.constant 0 : i32
    %c0_i32_0 = arith.constant 0 : i32
    return %arg0, %c0_i32 : i32, i32
  }
  func.func @transform_1(%arg0: i32) -> (i32, i32) {
    %c0_i32 = arith.constant 0 : i32
    %c0_i32_0 = arith.constant 0 : i32
    return %arg0, %c0_i32 : i32, i32
  }
  func.func @transform_2(%arg0: i32) -> (i32, i32) {
    %c0_i32 = arith.constant 0 : i32
    %c0_i32_0 = arith.constant 0 : i32
    return %arg0, %c0_i32 : i32, i32
  }
  func.func @transform_3(%arg0: i32) -> (i32, i32, i32) {
    %c0_i32 = arith.constant 0 : i32
    %c0_i32_0 = arith.constant 0 : i32
    %c0_i32_1 = arith.constant 0 : i32
    return %arg0, %c0_i32, %c0_i32_0 : i32, i32, i32
  }
}

</mosaic_0001>

<bundles_post_ra>
// kernel: _lambda_.1
= control target key start
LH: loop header
LB: loop body
LE: loop exit
PB: predicated region body
PF: predicated region fallthrough
CT: control target
= control target key end

     0   :  { %8 = vsyncpa [#allocation3], 0  ;;  %s250_s0 = inlined_call_operand.hbm [shape: f32[8,32], index: 0, kind: input, shape index: {}]   ;;  %s251_s1 = inlined_call_operand.hbm [shape: f32[8,32], index: 1, kind: input, shape index: {}]   ;;  %s252_s2 = inlined_call_operand.hbm [shape: f32[8,32], index: 2, kind: input, shape index: {}]   ;;  %s253_s3 = inlined_call_operand.vmem [shape: f32[1,8,128], index: 3, kind: output, shape index: {}]  }
   0x1   :  { %9 = vsyncpa [#allocation5], 0  ;;  %s183_s12 = smov [#allocation4]   ;;  %s184_s14 = smov [#allocation2]  }
   0x2   :  { %s26_s13 = sshll.u32 %s183_s12, 4  ;;  %s16_s15 = sshll.u32 %s184_s14, 4  ;;  %s27_s13 = int_to_ptr.vmem [resolvable:$true] %s26_s13  ;;  %s17_s15 = int_to_ptr.vmem [resolvable:$true] %s16_s15 }
   0x3   :  { %s113_s18 = scalar_lea.hbm %s251_s1, 128 }
   0x4   :  { %p114_p0 = scmp.ne.s32.totalorder %s251_s1, %s113_s18  ;;  %p117_p1 = scmp.lt.u32.totalorder %s113_s18, %s251_s1 }
   0x6   :  { %p119_p2 = pnand %p117_p1, %p114_p0 }
   0x8   :  { %122 = shalt.err (!%p119_p2)
}
   0x9   :  { %s123_s23 = scalar_lea.vmem %s27_s13, 128  ;;  %p128_p4 = scmp.lt.s32.totalorder %s27_s13, %s27_s13 }
   0xa   :  { %p124_p3 = scmp.ne.s32.totalorder %s27_s13, %s123_s23  ;;  %p129_p5 = scmp.lt.s32.totalorder %s123_s23, %s123_s23 }
   0xc   :  { %p130_p6 = por %p129_p5, %p128_p4 }
   0xe   :  { %p131_p7 = pnand %p130_p6, %p124_p3 }
  0x10   :  { %134 = shalt.err (!%p131_p7)
}
  0x11   :  { %29 = dma.hbm_to_vmem [thread:$0]  %s251_s1, 128, %s27_s13, [#allocation5]  }
  0x12   :  { %s135_s28 = scalar_lea.hbm %s250_s0, 128 }
  0x13   :  { %p136_p8 = scmp.ne.s32.totalorder %s250_s0, %s135_s28  ;;  %p139_p9 = scmp.lt.u32.totalorder %s135_s28, %s250_s0 }
  0x15   :  { %p141_p10 = pnand %p139_p9, %p136_p8 }
  0x17   :  { %144 = shalt.err (!%p141_p10)
}
  0x18   :  { %s145_s6 = scalar_lea.vmem %s17_s15, 128  ;;  %p150_p12 = scmp.lt.s32.totalorder %s17_s15, %s17_s15 }
  0x19   :  { %p146_p11 = scmp.ne.s32.totalorder %s17_s15, %s145_s6  ;;  %p151_p13 = scmp.lt.s32.totalorder %s145_s6, %s145_s6 }
  0x1b   :  { %p152_p0 = por %p151_p13, %p150_p12 }
  0x1d   :  { %p153_p1 = pnand %p152_p0, %p146_p11 }
  0x1f   :  { %156 = shalt.err (!%p153_p1)
}
  0x20   :  { %19 = dma.hbm_to_vmem [thread:$0]  %s250_s0, 128, %s17_s15, [#allocation3]  }
  0x21   :  { %s185_s8 = smov [#allocation6]   ;;  %s157_s12 = scalar_lea.hbm %s252_s2, 128 }
  0x22   :  { %s36_s9 = sshll.u32 %s185_s8, 4  ;;  %p158_p2 = scmp.ne.s32.totalorder %s252_s2, %s157_s12  ;;  %s37_s9 = int_to_ptr.vmem [resolvable:$true] %s36_s9 }
  0x23   :  { %p161_p3 = scmp.lt.u32.totalorder %s157_s12, %s252_s2 }
  0x25   :  { %p163_p4 = pnand %p161_p3, %p158_p2 }
  0x27   :  { %166 = shalt.err (!%p163_p4)
}
  0x28   :  { %s167_s18 = scalar_lea.vmem %s37_s9, 128  ;;  %p172_p6 = scmp.lt.s32.totalorder %s37_s9, %s37_s9 }
  0x29   :  { %p168_p5 = scmp.ne.s32.totalorder %s37_s9, %s167_s18  ;;  %p173_p7 = scmp.lt.s32.totalorder %s167_s18, %s167_s18 }
  0x2b   :  { %p174_p8 = por %p173_p7, %p172_p6 }
  0x2d   :  { %p175_p9 = pnand %p174_p8, %p168_p5 }
  0x2f   :  { %178 = shalt.err (!%p175_p9)
}
  0x30   :  { %39 = dma.hbm_to_vmem [thread:$0]  %s252_s2, 128, %s37_s9, [#allocation5]  }
  0x31   :  { %179 = dma.done.wait [#allocation3], 128  }
  0x32   :  { %180 = vsyncadd [#allocation3], 4294967168 }
  0x33   :  { %181 = dma.done.wait [#allocation5], 256  }
  0x34   :  { %182 = vsyncadd [#allocation5], 4294967040  ;;  %v51_v0 = vld [vmem:[#allocation6] sm:$0xff]  ;;  %vm53_vm0 = vcmask 261120   ;;  %v49_v1 = vld [vmem:[#allocation2] sm:$0xff] }
  0x35   :  { %v50_v2 = vld [vmem:[#allocation4] sm:$0xff]  ;;  %v61_v3 = vmul.f32 %v51_v0, %v51_v0  ;;  %v52_v4 = vmul.f32 %v49_v1, %v49_v1  ;;  %v69_v10 = vmul.f32 %v51_v0, %v49_v1 }
  0x36   :  { %v57_v5 = vmul.f32 %v50_v2, %v50_v2  ;;  %v65_v6 = vmul.f32 %v50_v2, %v49_v1 }
  0x37   :  { %v62_v7 = vsel %vm53_vm0, %v61_v3, 0.0  ;;  %v54_v8 = vsel %vm53_vm0, %v52_v4, 0.0  ;;  %v70_v12 = vsel %vm53_vm0, %v69_v10, 0.0 }
  0x38   :  { %63 = vadd.xlane.f32.xlu1 %v62_v7  ;;  %55 = vadd.xlane.f32.xlu0 %v54_v8  ;;  %v58_v9 = vsel %vm53_vm0, %v57_v5, 0.0  ;;  %v66_v11 = vsel %vm53_vm0, %v65_v6, 0.0 }
  0x3c   :  { %59 = vadd.xlane.f32.xlu0 %v58_v9  ;;  %67 = vadd.xlane.f32.xlu1 %v66_v11 }
  0x40   :  { %71 = vadd.xlane.f32.xlu0 %v70_v12 }
  0xc5   :  { %v64_v13 = vpop.xlane.xlu1 %63  ;;  %v56_v14 = vpop.xlane.xlu0 %55 }
  0xc6   :  { %v77_v15 = vmul.f32 %v64_v13, %v56_v14 }
  0xc8   :  { %v78_v16 = vmax.f32 %v77_v15, 1e-16 }
  0xc9   :  { %v60_v17 = vpop.xlane.xlu0 %59  ;;  %v68_v22 = vpop.xlane.xlu1 %67 }
  0xca   :  { %109 = vrsqrt.f32 %v78_v16  ;;  %v73_v18 = vmul.f32 %v60_v17, %v56_v14 }
  0xcc   :  { %v74_v19 = vmax.f32 %v73_v18, 1e-16 }
  0xcd   :  { %v72_v21 = vpop.xlane.xlu0 %71 }
  0xce   :  { %111 = vrsqrt.f32 %v74_v19 }
  0xd4   :  { %v110_v20 = vpop.eup %109 }
  0xd5   :  { %v80_v23 = vmul.f32 %v110_v20, %v72_v21 }
  0xd7   :  { %v82_v26 = vsub.f32 1.0, %v80_v23 }
  0xd8   :  { %v112_v24 = vpop.eup %111 }
  0xd9   :  { %v76_v25 = vmul.f32 %v112_v24, %v68_v22 }
  0xdb   :  { %v81_v27 = vsub.f32 1.0, %v76_v25 }
  0xdd   :  { %v83_v28 = vsub.f32 %v81_v27, %v82_v26 }
  0xdf   :  { %v84_v29 = vadd.f32 0.5, %v83_v28 }
  0xe1   :  { %v85_v30 = vmax.f32 %v84_v29, 0.0 }
  0xe3   :  { %v93_v31 = vrot.slane %v85_v30, 4 }
  0xe5   :  { %v94_v32 = vadd.f32 %v93_v31, %v85_v30 }
  0xe7   :  { %v95_v33 = vrot.slane %v94_v32, 2 }
  0xe9   :  { %v96_v34 = vadd.f32 %v95_v33, %v94_v32 }
  0xeb   :  { %v97_v35 = vrot.slane %v96_v34, 1 }
  0xed   :  { %v98_v36 = vadd.f32 %v97_v35, %v96_v34 }
  0xef   :  { %99 = vst [vmem:[%s253_s3] sm:$0xff] %v98_v36 }
  0xf0   :  { %104 = vsyncpa [#allocation3], 1 }
  0xf1   :  { %105 = vsyncpa [#allocation5], 1 }

</bundles_post_ra>
